<compile_context>
chip_gen: v6e
topology: v6e:2x2x1
jax: 0.10.0
libtpu: 0.0.40
codegen_flags: <defaults>
</compile_context>

<pallas_src>
import functools

import jax
import jax.numpy as jnp
from jax import lax
from jax.experimental import pallas as pl
from jax.experimental.pallas import tpu as pltpu

HIDDEN = 256
BN_EPS = 1e-5
LANE = 128
NEG_BIG = -1e30   # bias pad so padded logit columns vanish under softmax


def _round_up(x, m):
    return (x + m - 1) // m * m


# ---------- Phase 1: Linear(D,256)+ReLU, emit per-tile partial BN statistics ----------
def _phase1_kernel(x_ref, w1_ref, b1_ref, psum_ref, psumsq_ref,
                   *, batch, tile, mask_rows):
    i = pl.program_id(0)
    xb = x_ref[...].astype(jnp.bfloat16)                       # in-kernel cast (one HBM read of x)
    h = jnp.dot(xb, w1_ref[...], preferred_element_type=jnp.float32)
    h = jnp.maximum(h + b1_ref[...], 0.0)                      # (TB, 256) f32

    if mask_rows:  # static: only emitted when the batch was padded
        rows = i * tile + lax.broadcasted_iota(jnp.int32, (tile, 1), 0)
        h = jnp.where(rows < batch, h, 0.0)

    # Layout-free reshape (splits the sublane axis); reduce the TB/8 slabs only,
    # the final (8 x nb)-row reduction is a tiny XLA op in the wrapper.
    h3 = h.reshape(tile // 8, 8, HIDDEN)
    psum_ref[...] = jnp.sum(h3, axis=0)                        # (8, 256) f32 partial
    psumsq_ref[...] = jnp.sum(h3 * h3, axis=0)


# ---------- Phase 2: recompute h, BN folded into W2'/b2', softmax ----------
def _phase2_kernel(x_ref, w1_ref, b1_ref, w2_ref, b2_ref, out_ref):
    xb = x_ref[...].astype(jnp.bfloat16)
    h = jnp.dot(xb, w1_ref[...], preferred_element_type=jnp.float32)
    h = jnp.maximum(h + b1_ref[...], 0.0)                      # identical to phase-1 h
    logits = jnp.dot(h.astype(jnp.bfloat16), w2_ref[...],
                     preferred_element_type=jnp.float32) + b2_ref[...]
    m = jnp.max(logits, axis=1, keepdims=True)
    e = jnp.exp(logits - m)
    out_ref[...] = (e / jnp.sum(e, axis=1, keepdims=True)).astype(out_ref.dtype)


def ddclustering_forward(x, w1, b1, gamma, beta, w2, b2, *, tile_b=None):
    B, D = x.shape
    C = w2.shape[1]
    C_pad = _round_up(max(C, LANE), LANE)      # lane-dense stores + full MXU columns

    # --- generation-aware VMEM budget ---
    try:
        vmem_cap = int(getattr(pltpu.get_tpu_info(), "vmem_capacity_bytes", 64 << 20))
    except Exception:
        vmem_cap = 64 << 20

    if tile_b is None:
        if vmem_cap >= (96 << 20):             # v5e / v6e: 128 MiB physical VMEM
            tile_b = 2048 if D <= 128 else 1024
        else:                                  # v7x: 64 MiB per TensorCore
            tile_b = 512
    TB = min(tile_b, _round_up(B, 8))
    TB = max(8, TB - TB % 8)

    def _vmem_need(tb):
        p1 = (2 * tb * D * 4                   # x f32 tile (double-buffered)
              + 2 * D * HIDDEN * 2             # W1 bf16
              + 2 * HIDDEN * 4                 # b1
              + 4 * 8 * HIDDEN * 4             # partial-stat outputs
              + 2 * tb * HIDDEN * 4)           # f32 h temporaries headroom
        p2 = (2 * tb * D * 4 + 2 * D * HIDDEN * 2 + 2 * HIDDEN * 4
              + 2 * HIDDEN * C_pad * 2         # W2' bf16
              + 2 * C_pad * 4                  # b2'
              + 2 * tb * C_pad * 4             # output f32
              + 2 * tb * HIDDEN * 4            # h temporaries
              + 2 * tb * C_pad * 4)            # logits/exp temporaries
        return max(p1, p2)

    # Shrink-to-fit instead of silently clamping vmem_limit_bytes below the need.
    while _vmem_need(TB) > int(0.8 * vmem_cap) and TB > 8:
        TB = max(8, (TB // 2) - (TB // 2) % 8)
    # TODO(synk): for inputDim so large that W1 alone blows VMEM even at TB=8, add a
    # K-tiled (D-axis) grid with an f32 accumulator scratch instead of batch shrinking.

    B_pad = _round_up(B, TB)
    nb = B_pad // TB
    vmem_bytes = int(min(max(int(1.25 * _vmem_need(TB)), 4 << 20),
                         int(0.9 * vmem_cap)))

    # --- wrapper-side prep: x stays f32 (cast in-kernel), pad batch only if needed ---
    x_f32 = x.astype(jnp.float32)
    if B_pad != B:
        x_f32 = jnp.pad(x_f32, ((0, B_pad - B), (0, 0)))
    w1_b = w1.astype(jnp.bfloat16)
    b1_r = b1.reshape(1, HIDDEN).astype(jnp.float32)

    # ---- Phase 1: per-tile partial column sum / sum-of-squares ----
    psum, psumsq = pl.pallas_call(
        functools.partial(_phase1_kernel, batch=B, tile=TB, mask_rows=(B_pad != B)),
        out_shape=(jax.ShapeDtypeStruct((nb * 8, HIDDEN), jnp.float32),
                   jax.ShapeDtypeStruct((nb * 8, HIDDEN), jnp.float32)),
        grid=(nb,),
        in_specs=[pl.BlockSpec((TB, D), lambda i: (i, 0)),
                  pl.BlockSpec((D, HIDDEN), lambda i: (0, 0)),
                  pl.BlockSpec((1, HIDDEN), lambda i: (0, 0))],
        out_specs=(pl.BlockSpec((8, HIDDEN), lambda i: (i, 0)),
                   pl.BlockSpec((8, HIDDEN), lambda i: (i, 0))),
        compiler_params=pltpu.CompilerParams(
            dimension_semantics=("parallel",),
            vmem_limit_bytes=vmem_bytes),
    )(x_f32, w1_b, b1_r)

    # ---- wrapper: exact biased batch stats, fold BN affine into W2'/b2' (tiny) ----
    col_sum = jnp.sum(psum, axis=0, keepdims=True)             # (1, 256)
    col_sumsq = jnp.sum(psumsq, axis=0, keepdims=True)
    inv_b = 1.0 / B
    mean = col_sum * inv_b
    var = jnp.maximum(col_sumsq * inv_b - mean * mean, 0.0)
    inv_std = lax.rsqrt(var + BN_EPS)
    scale = gamma.reshape(1, HIDDEN).astype(jnp.float32) * inv_std
    shift = beta.reshape(1, HIDDEN).astype(jnp.float32) - mean * scale

    w2_pad = jnp.pad(w2.astype(jnp.float32), ((0, 0), (0, C_pad - C)))
    b2_pad = jnp.pad(b2.reshape(1, C).astype(jnp.float32),
                     ((0, 0), (0, C_pad - C)), constant_values=NEG_BIG)
    w2_eff = (scale.reshape(HIDDEN, 1) * w2_pad).astype(jnp.bfloat16)   # (256, C_pad)
    b2_eff = b2_pad + shift @ w2_pad                                    # pad cols stay -1e30

    # ---- Phase 2: recompute h, single matmul against folded W2', softmax ----
    out_pad = pl.pallas_call(
        _phase2_kernel,
        out_shape=jax.ShapeDtypeStruct((B_pad, C_pad), jnp.float32),
        grid=(nb,),
        in_specs=[pl.BlockSpec((TB, D), lambda i: (i, 0)),
                  pl.BlockSpec((D, HIDDEN), lambda i: (0, 0)),
                  pl.BlockSpec((1, HIDDEN), lambda i: (0, 0)),
                  pl.BlockSpec((HIDDEN, C_pad), lambda i: (0, 0)),
                  pl.BlockSpec((1, C_pad), lambda i: (0, 0))],
        out_specs=pl.BlockSpec((TB, C_pad), lambda i: (i, 0)),
        compiler_params=pltpu.CompilerParams(
            dimension_semantics=("parallel",),
            vmem_limit_bytes=vmem_bytes),
    )(x_f32, w1_b, b1_r, w2_eff, b2_eff)

    # Padded batch rows (if any) carry garbage softmax rows; sliced off here.
    return out_pad[:B, :C]


def init_params(key, input_dim, n_cluster):
    """Deterministic synthetic params mimicking nn.Linear / nn.BatchNorm1d shapes."""
    k1, k2, k3, k4 = jax.random.split(key, 4)
    bound1 = 1.0 / jnp.sqrt(input_dim)
    w1 = jax.random.uniform(k1, (input_dim, HIDDEN), jnp.float32, -bound1, bound1)
    b1 = jax.random.uniform(k2, (1, HIDDEN), jnp.float32, -bound1, bound1)
    gamma = jnp.ones((1, HIDDEN), jnp.float32)   # BatchNorm1d weight
    beta = jnp.zeros((1, HIDDEN), jnp.float32)   # BatchNorm1d bias
    bound2 = 1.0 / jnp.sqrt(HIDDEN)
    w2 = jax.random.uniform(k3, (HIDDEN, n_cluster), jnp.float32, -bound2, bound2)
    b2 = jax.random.uniform(k4, (1, n_cluster), jnp.float32, -bound2, bound2)
    return w1, b1, gamma, beta, w2, b2


if __name__ == "__main__":
    B, INPUT_DIM, N_CLUSTER = 8, 32, 16

    key = jax.random.PRNGKey(0)
    kx, kp = jax.random.split(key)
    x = jax.random.normal(kx, (B, INPUT_DIM), jnp.float32)
    params = init_params(kp, INPUT_DIM, N_CLUSTER)

    out = jax.jit(ddclustering_forward)(x, *params)
    out = jax.block_until_ready(out)

    # Pure-JAX f32 reference (PyTorch training-mode BatchNorm semantics).
    w1, b1, gamma, beta, w2, b2 = params
    h = jnp.maximum(x @ w1 + b1, 0.0)
    mu = jnp.mean(h, axis=0, keepdims=True)
    var = jnp.mean((h - mu) ** 2, axis=0, keepdims=True)
    hn = (h - mu) * lax.rsqrt(var + BN_EPS) * gamma + beta
    ref = jax.nn.softmax(hn @ w2 + b2, axis=1)

    assert out.shape == (B, N_CLUSTER)
    # bf16 MXU operands -> deliberately relaxed elementwise tolerance.
    assert jnp.allclose(out, ref, atol=2e-2, rtol=2e-2)
    # Exact (non-approx) softmax normalization -> rows sum to 1 tightly.
    assert jnp.allclose(jnp.sum(out, axis=1), 1.0, atol=1e-4)

    print("KERNEL_OK")
</pallas_src>

<mosaic_0001>
module attributes {stable_mosaic.version = 11 : i64} {
  func.func @_phase1_kernel(%arg0: i32, %arg1: memref<8x32xf32, #tpu.memory_space<vmem>>, %arg2: memref<32x256xbf16, #tpu.memory_space<vmem>>, %arg3: memref<1x256xf32, #tpu.memory_space<vmem>>, %arg4: memref<8x256xf32, #tpu.memory_space<vmem>>, %arg5: memref<8x256xf32, #tpu.memory_space<vmem>>) attributes {dimension_semantics = [#tpu.dimension_semantics<parallel>], iteration_bounds = array<i64: 1>, scalar_prefetch = 0 : i64, scratch_operands = 0 : i64, tpu.core_type = #tpu.core_type<tc>, window_params = [{transform_indices = @transform_0, window_bounds = array<i64: 8, 32>}, {pipeline_mode = #tpu.pipeline_mode<synchronous>, transform_indices = @transform_1, window_bounds = array<i64: 32, 256>}, {pipeline_mode = #tpu.pipeline_mode<synchronous>, transform_indices = @transform_2, window_bounds = array<i64: 1, 256>}, {transform_indices = @transform_3, window_bounds = array<i64: 8, 256>}, {transform_indices = @transform_4, window_bounds = array<i64: 8, 256>}]} {
    %c0 = arith.constant 0 : index
    %c0_0 = arith.constant 0 : index
    %0 = vector.load %arg1[%c0, %c0_0] : memref<8x32xf32, #tpu.memory_space<vmem>>, vector<8x32xf32>
    %1 = arith.truncf %0 : vector<8x32xf32> to vector<8x32xbf16>
    %c0_1 = arith.constant 0 : index
    %c0_2 = arith.constant 0 : index
    %2 = vector.load %arg2[%c0_1, %c0_2] : memref<32x256xbf16, #tpu.memory_space<vmem>>, vector<32x256xbf16>
    %cst = arith.constant dense<0.000000e+00> : vector<8x256xf32>
    %3 = tpu.matmul %1, %2, %cst {dimension_numbers = #tpu.dot_dimension_numbers<[1], [0], [0], [1], [0, 0, 1, 1], [], []>} : vector<8x32xbf16>, vector<32x256xbf16>, vector<8x256xf32> -> vector<8x256xf32>
    %c0_3 = arith.constant 0 : index
    %c0_4 = arith.constant 0 : index
    %4 = vector.load %arg3[%c0_3, %c0_4] : memref<1x256xf32, #tpu.memory_space<vmem>>, vector<1x256xf32>
    %5 = vector.broadcast %4 : vector<1x256xf32> to vector<8x256xf32>
    %6 = arith.addf %3, %5 : vector<8x256xf32>
    %cst_5 = arith.constant 0.000000e+00 : f32
    %7 = vector.broadcast %cst_5 : f32 to vector<8x256xf32>
    %8 = arith.maximumf %6, %7 : vector<8x256xf32>
    %9 = vector.shape_cast %8 : vector<8x256xf32> to vector<1x8x256xf32>
    %cst_6 = arith.constant dense<0.000000e+00> : vector<8x256xf32>
    %10 = vector.multi_reduction <add>, %9, %cst_6 [0] : vector<1x8x256xf32> to vector<8x256xf32>
    %c0_7 = arith.constant 0 : index
    %c0_8 = arith.constant 0 : index
    %11 = vector.load %arg4[%c0_7, %c0_8] : memref<8x256xf32, #tpu.memory_space<vmem>>, vector<8x256xf32>
    tpu.vector_store %arg4[%c0_7, %c0_8], %10 {strides = array<i32>} : memref<8x256xf32, #tpu.memory_space<vmem>>, vector<8x256xf32>,
    %12 = arith.mulf %9, %9 : vector<1x8x256xf32>
    %cst_9 = arith.constant dense<0.000000e+00> : vector<8x256xf32>
    %13 = vector.multi_reduction <add>, %12, %cst_9 [0] : vector<1x8x256xf32> to vector<8x256xf32>
    %c0_10 = arith.constant 0 : index
    %c0_11 = arith.constant 0 : index
    %14 = vector.load %arg5[%c0_10, %c0_11] : memref<8x256xf32, #tpu.memory_space<vmem>>, vector<8x256xf32>
    tpu.vector_store %arg5[%c0_10, %c0_11], %13 {strides = array<i32>} : memref<8x256xf32, #tpu.memory_space<vmem>>, vector<8x256xf32>,
    return
  }
  func.func @transform_0(%arg0: i32) -> (i32, i32) {
    %c0_i32 = arith.constant 0 : i32
    %c0_i32_0 = arith.constant 0 : i32
    return %arg0, %c0_i32 : i32, i32
  }
  func.func @transform_1(%arg0: i32) -> (i32, i32) {
    %c0_i32 = arith.constant 0 : i32
    %c0_i32_0 = arith.constant 0 : i32
    %c0_i32_1 = arith.constant 0 : i32
    return %c0_i32, %c0_i32_0 : i32, i32
  }
  func.func @transform_2(%arg0: i32) -> (i32, i32) {
    %c0_i32 = arith.constant 0 : i32
    %c0_i32_0 = arith.constant 0 : i32
    %c0_i32_1 = arith.constant 0 : i32
    return %c0_i32, %c0_i32_0 : i32, i32
  }
  func.func @transform_3(%arg0: i32) -> (i32, i32) {
    %c0_i32 = arith.constant 0 : i32
    %c0_i32_0 = arith.constant 0 : i32
    return %arg0, %c0_i32 : i32, i32
  }
  func.func @transform_4(%arg0: i32) -> (i32, i32) {
    %c0_i32 = arith.constant 0 : i32
    %c0_i32_0 = arith.constant 0 : i32
    return %arg0, %c0_i32 : i32, i32
  }
}

module attributes {stable_mosaic.version = 11 : i64} {
  func.func @_phase2_kernel(%arg0: i32, %arg1: memref<8x32xf32, #tpu.memory_space<vmem>>, %arg2: memref<32x256xbf16, #tpu.memory_space<vmem>>, %arg3: memref<1x256xf32, #tpu.memory_space<vmem>>, %arg4: memref<256x128xbf16, #tpu.memory_space<vmem>>, %arg5: memref<1x128xf32, #tpu.memory_space<vmem>>, %arg6: memref<8x128xf32, #tpu.memory_space<vmem>>) attributes {dimension_semantics = [#tpu.dimension_semantics<parallel>], iteration_bounds = array<i64: 1>, scalar_prefetch = 0 : i64, scratch_operands = 0 : i64, tpu.core_type = #tpu.core_type<tc>, window_params = [{transform_indices = @transform_0, window_bounds = array<i64: 8, 32>}, {pipeline_mode = #tpu.pipeline_mode<synchronous>, transform_indices = @transform_1, window_bounds = array<i64: 32, 256>}, {pipeline_mode = #tpu.pipeline_mode<synchronous>, transform_indices = @transform_2, window_bounds = array<i64: 1, 256>}, {pipeline_mode = #tpu.pipeline_mode<synchronous>, transform_indices = @transform_3, window_bounds = array<i64: 256, 128>}, {pipeline_mode = #tpu.pipeline_mode<synchronous>, transform_indices = @transform_4, window_bounds = array<i64: 1, 128>}, {transform_indices = @transform_5, window_bounds = array<i64: 8, 128>}]} {
    %c0 = arith.constant 0 : index
    %c0_0 = arith.constant 0 : index
    %0 = vector.load %arg1[%c0, %c0_0] : memref<8x32xf32, #tpu.memory_space<vmem>>, vector<8x32xf32>
    %1 = arith.truncf %0 : vector<8x32xf32> to vector<8x32xbf16>
    %c0_1 = arith.constant 0 : index
    %c0_2 = arith.constant 0 : index
    %2 = vector.load %arg2[%c0_1, %c0_2] : memref<32x256xbf16, #tpu.memory_space<vmem>>, vector<32x256xbf16>
    %cst = arith.constant dense<0.000000e+00> : vector<8x256xf32>
    %3 = tpu.matmul %1, %2, %cst {dimension_numbers = #tpu.dot_dimension_numbers<[1], [0], [0], [1], [0, 0, 1, 1], [], []>} : vector<8x32xbf16>, vector<32x256xbf16>, vector<8x256xf32> -> vector<8x256xf32>
    %c0_3 = arith.constant 0 : index
    %c0_4 = arith.constant 0 : index
    %4 = vector.load %arg3[%c0_3, %c0_4] : memref<1x256xf32, #tpu.memory_space<vmem>>, vector<1x256xf32>
    %5 = vector.broadcast %4 : vector<1x256xf32> to vector<8x256xf32>
    %6 = arith.addf %3, %5 : vector<8x256xf32>
    %cst_5 = arith.constant 0.000000e+00 : f32
    %7 = vector.broadcast %cst_5 : f32 to vector<8x256xf32>
    %8 = arith.maximumf %6, %7 : vector<8x256xf32>
    %9 = arith.truncf %8 : vector<8x256xf32> to vector<8x256xbf16>
    %c0_6 = arith.constant 0 : index
    %c0_7 = arith.constant 0 : index
    %10 = vector.load %arg4[%c0_6, %c0_7] : memref<256x128xbf16, #tpu.memory_space<vmem>>, vector<256x128xbf16>
    %cst_8 = arith.constant dense<0.000000e+00> : vector<8x128xf32>
    %11 = tpu.matmul %9, %10, %cst_8 {dimension_numbers = #tpu.dot_dimension_numbers<[1], [0], [0], [1], [0, 0, 1, 1], [], []>} : vector<8x256xbf16>, vector<256x128xbf16>, vector<8x128xf32> -> vector<8x128xf32>
    %c0_9 = arith.constant 0 : index
    %c0_10 = arith.constant 0 : index
    %12 = vector.load %arg5[%c0_9, %c0_10] : memref<1x128xf32, #tpu.memory_space<vmem>>, vector<1x128xf32>
    %13 = vector.broadcast %12 : vector<1x128xf32> to vector<8x128xf32>
    %14 = arith.addf %11, %13 : vector<8x128xf32>
    %cst_11 = arith.constant dense<0xFF800000> : vector<8xf32>
    %15 = vector.multi_reduction <maximumf>, %14, %cst_11 [1] : vector<8x128xf32> to vector<8xf32>
    %16 = vector.shape_cast %15 : vector<8xf32> to vector<8x1xf32>
    %17 = vector.broadcast %16 : vector<8x1xf32> to vector<8x128xf32>
    %18 = arith.subf %14, %17 : vector<8x128xf32>
    %19 = math.exp %18 : vector<8x128xf32>
    %cst_12 = arith.constant dense<0.000000e+00> : vector<8xf32>
    %20 = vector.multi_reduction <add>, %19, %cst_12 [1] : vector<8x128xf32> to vector<8xf32>
    %21 = vector.shape_cast %20 : vector<8xf32> to vector<8x1xf32>
    %22 = vector.broadcast %21 : vector<8x1xf32> to vector<8x128xf32>
    %23 = arith.divf %19, %22 : vector<8x128xf32>
    %c0_13 = arith.constant 0 : index
    %c0_14 = arith.constant 0 : index
    %24 = vector.load %arg6[%c0_13, %c0_14] : memref<8x128xf32, #tpu.memory_space<vmem>>, vector<8x128xf32>
    tpu.vector_store %arg6[%c0_13, %c0_14], %23 {strides = array<i32>} : memref<8x128xf32, #tpu.memory_space<vmem>>, vector<8x128xf32>,
    return
  }
  func.func @transform_0(%arg0: i32) -> (i32, i32) {
    %c0_i32 = arith.constant 0 : i32
    %c0_i32_0 = arith.constant 0 : i32
    return %arg0, %c0_i32 : i32, i32
  }
  func.func @transform_1(%arg0: i32) -> (i32, i32) {
    %c0_i32 = arith.constant 0 : i32
    %c0_i32_0 = arith.constant 0 : i32
    %c0_i32_1 = arith.constant 0 : i32
    return %c0_i32, %c0_i32_0 : i32, i32
  }
  func.func @transform_2(%arg0: i32) -> (i32, i32) {
    %c0_i32 = arith.constant 0 : i32
    %c0_i32_0 = arith.constant 0 : i32
    %c0_i32_1 = arith.constant 0 : i32
    return %c0_i32, %c0_i32_0 : i32, i32
  }
  func.func @transform_3(%arg0: i32) -> (i32, i32) {
    %c0_i32 = arith.constant 0 : i32
    %c0_i32_0 = arith.constant 0 : i32
    %c0_i32_1 = arith.constant 0 : i32
    return %c0_i32, %c0_i32_0 : i32, i32
  }
  func.func @transform_4(%arg0: i32) -> (i32, i32) {
    %c0_i32 = arith.constant 0 : i32
    %c0_i32_0 = arith.constant 0 : i32
    %c0_i32_1 = arith.constant 0 : i32
    return %c0_i32, %c0_i32_0 : i32, i32
  }
  func.func @transform_5(%arg0: i32) -> (i32, i32) {
    %c0_i32 = arith.constant 0 : i32
    %c0_i32_0 = arith.constant 0 : i32
    return %arg0, %c0_i32 : i32, i32
  }
}

</mosaic_0001>

<bundles_post_ra>
// kernel: ddclustering_forward.2
= control target key start
LH: loop header
LB: loop body
LE: loop exit
PB: predicated region body
PF: predicated region fallthrough
CT: control target
= control target key end

     0   :  { %v132_v1 = vmov 0   ;;  %vm55_vm0 = vcmask 261120   ;;  %v25_v7 = vlaneseq  ;;  %s188_s1 = inlined_call_operand.vmem [shape: bf16[32,256], index: 1, kind: input, shape index: {}]   ;;  %s189_s0 = inlined_call_operand.vmem [shape: f32[8,32], index: 0, kind: input, shape index: {}]   ;;  %s190_s2 = inlined_call_operand.vmem [shape: f32[1,256], index: 2, kind: input, shape index: {}]   ;;  %s191_s3 = inlined_call_operand.vmem [shape: f32[8,256], index: 3, kind: output, shape index: {0}]   ;;  %s192_s4 = inlined_call_operand.vmem [shape: f32[8,256], index: 4, kind: output, shape index: {1}]  }
   0x1   :  { %v126_v0 = vld [vmem:[%s188_s1 + $0x14] ss:$8 sps:$4 sm:$0xff]   ;;  %91 = vmatprep.mubr.bf16.mxu0 %v132_v1  ;;  %v128_v2 = vld [vmem:[%s188_s1 + $0x10] ss:$8 sps:$4 sm:$0xff]   ;;  %v129_v3 = vld [vmem:[%s188_s1 + $0x4] ss:$8 sps:$4 sm:$0xff]  }
   0x2   :  { %71 = vmatprep.subr.bf16.mxu0 %v126_v0  ;;  %v131_v4 = vld [vmem:[%s188_s1] ss:$8 sps:$4 sm:$0xff]   ;;  %v26_v8 = vshrl.u32 %v25_v7, 7 }
   0x3   :  { %72 = vmatpush1.bf16.msra.mxu0 %v128_v2  ;;  %v17_v5 = vld [vmem:[%s189_s0] sm:$0xff] }
   0x4   :  { %73 = vmatprep.subr.bf16.mxu0 %v129_v3  ;;  %v18_v6 = vpack.c.bf16 %v17_v5, %v17_v5  ;;  %v27_v9 = vsub.s32 0, %v26_v8  ;;  %v23_v10 = vld [vmem:[%s190_s2] sm:$0x3]  ;;  %v31_v11 = vsub.s32 1, %v26_v8 }
   0x6   :  { %v28_v12 = vrot.slane %v23_v10, %v27_v9  ;;  %v32_v13 = vrot.slane %v23_v10, %v31_v11 }
   0x7   :  { %74 = vmatpush1.bf16.msra.mxu0 %v131_v4 }
   0xa   :  { %124 = vmatmul.mubr.msk.bf16.vlgmr.msra.gmra.mxu0 %vm55_vm0, %v18_v6 }
  0xca   :  { %v93_v14 = vpop.f32.mrf.mxu0 }
  0xcb   :  { %v94_v15 = vadd.f32 %v93_v14, %v28_v12 }
  0xcc   :  { %v95_v16 = vpop.f32.mrf.mxu0 }
  0xcd   :  { %v100_v17 = vmax.f32 %v94_v15, 0.0  ;;  %v96_v18 = vadd.f32 %v95_v16, %v32_v13 }
  0xce   :  { %v97_v19 = vpop.f32.mrf.mxu0 }
  0xcf   :  { %104 = vst [vmem:[%s191_s3] sm:$0xff] %v100_v17  ;;  %v106_v20 = vmul.f32 %v100_v17, %v100_v17  ;;  %v101_v21 = vmax.f32 %v96_v18, 0.0 }
  0xd0   :  { %v98_v22 = vpop.f32.mrf.mxu0 }
  0xd1   :  { %110 = vst [vmem:[%s192_s4] sm:$0xff] %v106_v20  ;;  %105 = vst [vmem:[%s191_s3 + $0x8] sm:$0xff] %v101_v21  ;;  %v107_v23 = vmul.f32 %v101_v21, %v101_v21 }
  0xd3   :  { %111 = vst [vmem:[%s192_s4 + $0x8] sm:$0xff] %v107_v23 }

// kernel: ddclustering_forward.3
= control target key start
LH: loop header
LB: loop body
LE: loop exit
PB: predicated region body
PF: predicated region fallthrough
CT: control target
= control target key end

     0   :  { %v402_v2 = vmov 0   ;;  %vm60_vm0 = vcmask 261120   ;;  %s506_s0 = inlined_call_operand.vmem [shape: f32[8,32], index: 0, kind: input, shape index: {}]   ;;  %s507_s1 = inlined_call_operand.vmem [shape: bf16[32,256], index: 1, kind: input, shape index: {}]   ;;  %s508_s2 = inlined_call_operand.vmem [shape: f32[1,256], index: 2, kind: input, shape index: {}]   ;;  %s509_s3 = inlined_call_operand.vmem [shape: bf16[256,128], index: 3, kind: input, shape index: {}]   ;;  %s510_s4 = inlined_call_operand.vmem [shape: f32[1,128], index: 4, kind: input, shape index: {}]   ;;  %s511_s5 = inlined_call_operand.hbm [shape: f32[8,128], index: 5, kind: output, shape index: {}]  }
   0x1   :  { %v354_v0 = vld [vmem:[%s507_s1 + $0x14] ss:$8 sps:$4 sm:$0xff]   ;;  %v356_v1 = vld [vmem:[%s507_s1 + $0x10] ss:$8 sps:$4 sm:$0xff]   ;;  %96 = vmatprep.mubr.bf16.mxu0 %v402_v2  ;;  %v357_v3 = vld [vmem:[%s507_s1 + $0x4] ss:$8 sps:$4 sm:$0xff]  }
   0x2   :  { %76 = vmatprep.subr.bf16.mxu0 %v354_v0  ;;  %v359_v4 = vld [vmem:[%s507_s1] ss:$8 sps:$4 sm:$0xff]   ;;  %v360_v6 = vld [vmem:[%s509_s3 + $0x78] sm:$0xff]   ;;  %v362_v8 = vld [vmem:[%s509_s3 + $0x70] sm:$0xff]  }
   0x3   :  { %v22_v5 = vld [vmem:[%s506_s0] sm:$0xff]  ;;  %77 = vmatpush1.bf16.msra.mxu0 %v356_v1  ;;  %v361_v7 = vld [vmem:[%s509_s3 + $0x38] sm:$0xff]   ;;  %330 = vmatprep.subr.bf16.mxu1 %v360_v6  ;;  %v363_v10 = vld [vmem:[%s509_s3 + $0x30] sm:$0xff]  }
   0x4   :  { %78 = vmatprep.subr.bf16.mxu0 %v357_v3  ;;  %v23_v9 = vpack.c.bf16 %v22_v5, %v22_v5  ;;  %331 = vmatpush3.bf16.msra.mxu1 %v361_v7  ;;  %v364_v11 = vld [vmem:[%s509_s3 + $0x68] sm:$0xff]   ;;  %v366_v13 = vld [vmem:[%s509_s3 + $0x60] sm:$0xff]   ;;  %v368_v15 = vld [vmem:[%s509_s3 + $0x58] sm:$0xff]  }
   0x5   :  { %332 = vmatprep.subr.bf16.mxu1 %v362_v8  ;;  %v365_v12 = vld [vmem:[%s509_s3 + $0x28] sm:$0xff]   ;;  %v367_v14 = vld [vmem:[%s509_s3 + $0x20] sm:$0xff]   ;;  %v369_v16 = vld [vmem:[%s509_s3 + $0x18] sm:$0xff]  }
   0x7   :  { %79 = vmatpush1.bf16.msra.mxu0 %v359_v4 }
   0x8   :  { %333 = vmatpush3.bf16.msra.mxu1 %v363_v10 }
   0x9   :  { %334 = vmatprep.subr.bf16.mxu1 %v364_v11 }
   0xa   :  { %312 = vmatmul.mubr.msk.bf16.vlgmr.msra.gmra.mxu0 %vm60_vm0, %v23_v9 }
   0xc   :  { %335 = vmatpush3.bf16.msra.mxu1 %v365_v12 }
   0xd   :  { %336 = vmatprep.subr.bf16.mxu1 %v366_v13 }
  0x10   :  { %337 = vmatpush3.bf16.msra.mxu1 %v367_v14 }
  0x11   :  { %10 = vsyncpa [#allocation3], 0  ;;  %338 = vmatprep.subr.bf16.mxu1 %v368_v15  ;;  %v370_v17 = vld [vmem:[%s509_s3 + $0x50] sm:$0xff]   ;;  %v372_v19 = vld [vmem:[%s509_s3 + $0x48] sm:$0xff]   ;;  %v30_v23 = vlaneseq }
  0x12   :  { %v371_v18 = vld [vmem:[%s509_s3 + $0x10] sm:$0xff]   ;;  %v373_v20 = vld [vmem:[%s509_s3 + $0x8] sm:$0xff]   ;;  %v374_v21 = vld [vmem:[%s509_s3 + $0x40] sm:$0xff]  }
  0x13   :  { %v375_v22 = vld [vmem:[%s509_s3] sm:$0xff]   ;;  %v31_v24 = vshrl.u32 %v30_v23, 7 }
  0x14   :  { %339 = vmatpush3.bf16.msra.mxu1 %v369_v16  ;;  %v28_v26 = vld [vmem:[%s508_s2] sm:$0x3]  ;;  %s403_s2 = smov [#allocation2]  }
  0x15   :  { %340 = vmatprep.subr.bf16.mxu1 %v370_v17  ;;  %v32_v25 = vsub.s32 0, %v31_v24  ;;  %v36_v27 = vsub.s32 1, %v31_v24  ;;  %v313_v42 = vld [vmem:[%s510_s4] ss:$0 sm:$0xff]  ;;  %s300_s0 = sshll.u32 %s403_s2, 4  ;;  %s301_s0 = int_to_ptr.vmem [resolvable:$true] %s300_s0 }
  0x16   :  { %s380_s4 = scalar_lea.vmem %s301_s0, 128  ;;  %p385_p1 = scmp.lt.s32.totalorder %s301_s0, %s301_s0 }
  0x17   :  { %v33_v28 = vrot.slane %v28_v26, %v32_v25  ;;  %v37_v29 = vrot.slane %v28_v26, %v36_v27  ;;  %p381_p0 = scmp.ne.s32.totalorder %s301_s0, %s380_s4  ;;  %p386_p2 = scmp.lt.s32.totalorder %s380_s4, %s380_s4 }
  0x18   :  { %341 = vmatpush3.bf16.msra.mxu1 %v371_v18 }
  0x19   :  { %342 = vmatprep.subr.bf16.mxu1 %v372_v19  ;;  %p387_p3 = por %p386_p2, %p385_p1 }
  0x1b   :  { %p388_p4 = pnand %p387_p3, %p381_p0 }
  0x1c   :  { %343 = vmatpush3.bf16.msra.mxu1 %v373_v20 }
  0x1d   :  { %344 = vmatprep.subr.bf16.mxu1 %v374_v21 }
  0x20   :  { %345 = vmatpush3.bf16.msra.mxu1 %v375_v22 }
  0xca   :  { %v98_v30 = vpop.f32.mrf.mxu0 }
  0xcb   :  { %v99_v31 = vadd.f32 %v98_v30, %v33_v28 }
  0xcc   :  { %v100_v32 = vpop.f32.mrf.mxu0 }
  0xcd   :  { %v101_v33 = vadd.f32 %v100_v32, %v37_v29  ;;  %v105_v34 = vmax.f32 %v99_v31, 0.0 }
  0xce   :  { %v102_v35 = vpop.f32.mrf.mxu0 }
  0xcf   :  { %v106_v36 = vmax.f32 %v101_v33, 0.0  ;;  %v107_v39 = vpack.c.bf16 %v105_v34, %v105_v34 }
  0xd0   :  { %v103_v37 = vpop.f32.mrf.mxu0 }
  0xd1   :  { %v108_v38 = vpack.c.bf16 %v106_v36, %v106_v36 }
  0xd3   :  { %276 = vmatprep.mubr.bf16.mxu1 %v108_v38 }
  0xd4   :  { %277 = vmatmul.mubr.bf16.vlgmr.msra.gmra.mxu1 %v107_v39 }
 0x194   :  { %v346_v40 = vpop.f32.mrf.mxu1 }
 0x196   :  { %v347_v41 = vpop.f32.mrf.mxu1 }
 0x197   :  { %v348_v43 = vadd.f32 %v347_v41, %v346_v40 }
 0x198   :  { %v349_v44 = vpop.f32.mrf.mxu1 }
 0x199   :  { %v279_v45 = vadd.f32 %v348_v43, %v313_v42 }
 0x19a   :  { %v350_v46 = vpop.f32.mrf.mxu1 }
 0x19b   :  { %284 = vmax.xlane.f32.xlu0 %v279_v45 }
 0x224   :  { %v285_v47 = vpop.xlane.xlu0 %284 }
 0x225   :  { %v286_v48 = vsub.f32 %v279_v45, %v285_v47 }
 0x227   :  { %v287_v49 = vmul.f32 1.442695, %v286_v48 }
 0x229   :  { %376 = vpow2.f32 %v287_v49 }
 0x236   :  { %v377_v50 = vpop.eup %376 }
 0x237   :  { %289 = vadd.xlane.f32.xlu0 %v377_v50 }
 0x2c0   :  { %v290_v51 = vpop.xlane.xlu0 %289 }
 0x2c1   :  { %378 = vrcp.f32 %v290_v51 }
 0x2ce   :  { %v379_v52 = vpop.eup %378 }
 0x2cf   :  { %v292_v53 = vmul.f32 %v379_v52, %v377_v50 }
 0x2d1   :  { %293 = vst [vmem:[#allocation2] sm:$0xff] %v292_v53 }
 0x2d2   :  { %391 = shalt.err (!%p388_p4)
}
 0x2d3   :  { %303 = dma.vmem_to_hbm [thread:$0]  %s301_s0, 128, %s511_s5, [#allocation3]  }
 0x2d4   :  { %400 = dma.done.wait [#allocation3], 128  }
 0x2d5   :  { %401 = vsyncadd [#allocation3], 4294967168 }
 0x2d6   :  { %307 = vsyncpa [#allocation3], 1 }

</bundles_post_ra>
